<compile_context>
chip_gen: v5e
topology: v5e:2x2
jax: 0.10.0
libtpu: 0.0.40
codegen_flags: <defaults>
</compile_context>

<pallas_src>
import jax
import jax.numpy as jnp
from jax.experimental import pallas as pl
from jax.experimental.pallas import tpu as pltpu

_EPS = 1e-5
_SLOPE = 0.01  # nn.LeakyReLU() default negative_slope


def _leaky(y):
    return jnp.where(y > 0, y, _SLOPE * y)


# ----------------------------------------------------------------------------
# Kernel A: BatchNorm (train-mode batch stats) + LeakyReLU on a (C, B*H*W) view.
# ----------------------------------------------------------------------------
def _bn_lrelu_kernel(x_ref, g_ref, b_ref, o_ref):
    x = x_ref[...]
    mean = jnp.mean(x, axis=-1, keepdims=True)
    var = jnp.mean((x - mean) ** 2, axis=-1, keepdims=True)   # biased, as PyTorch BN
    y = (x - mean) * jax.lax.rsqrt(var + _EPS) * g_ref[...] + b_ref[...]
    o_ref[...] = _leaky(y).astype(o_ref.dtype)


# ----------------------------------------------------------------------------
# Kernel B: conv1 im2col-GEMM + bias + BatchNorm2 (column stats) + LeakyReLU.
#   p:(B*OH*OW, k*k*Cin)  w:(k*k*Cin, hidden)  -> (B*OH*OW, hidden)
# ----------------------------------------------------------------------------
def _gemm_bn_lrelu_kernel(p_ref, w_ref, cb_ref, g_ref, b_ref, o_ref):
    acc = jnp.dot(p_ref[...], w_ref[...], preferred_element_type=jnp.float32) + cb_ref[...]
    mean = jnp.mean(acc, axis=0, keepdims=True)               # per output channel
    var = jnp.mean((acc - mean) ** 2, axis=0, keepdims=True)
    y = (acc - mean) * jax.lax.rsqrt(var + _EPS) * g_ref[...] + b_ref[...]
    o_ref[...] = _leaky(y).astype(o_ref.dtype)


# ----------------------------------------------------------------------------
# Kernel C: conv2 im2col-GEMM + bias.
# ----------------------------------------------------------------------------
def _gemm_bias_kernel(p_ref, w_ref, cb_ref, o_ref):
    o_ref[...] = (jnp.dot(p_ref[...], w_ref[...], preferred_element_type=jnp.float32)
                  + cb_ref[...]).astype(o_ref.dtype)


def _vmem_call(kernel, out_shape, *args):
    """Single-step pallas_call, everything resident in VMEM (explicit specs)."""
    return pl.pallas_call(
        kernel,
        out_shape=out_shape,
        in_specs=[pl.BlockSpec(memory_space=pltpu.MemorySpace.VMEM)] * len(args),
        out_specs=pl.BlockSpec(memory_space=pltpu.MemorySpace.VMEM),
    )(*args)


def _im2col(x_nhwc, k, stride, pad):
    """Patch extraction (pure layout plumbing in XLA; no FLOPs)."""
    B, H, W, C = x_nhwc.shape
    xp = jnp.pad(x_nhwc, ((0, 0), (pad, pad), (pad, pad), (0, 0)))
    OH = (H + 2 * pad - k) // stride + 1
    OW = (W + 2 * pad - k) // stride + 1
    cols = []
    for ky in range(k):
        for kx in range(k):
            cols.append(jax.lax.slice(
                xp,
                (0, ky, kx, 0),
                (B, ky + (OH - 1) * stride + 1, kx + (OW - 1) * stride + 1, C),
                (1, stride, stride, 1)))                       # (B, OH, OW, C)
    pm = jnp.stack(cols, axis=3)                               # (B, OH, OW, k*k, C)
    return pm.reshape(B * OH * OW, k * k * C), OH, OW


@jax.jit
def _forward(params, x):
    B, C, H, W = x.shape
    hid = params["w1col"].shape[1]
    out_nc = params["w2col"].shape[1]

    # Stage 1: BN1 + LeakyReLU on lane-dense (C, B*H*W) view (single grid step).
    x_cn = jnp.transpose(x, (1, 0, 2, 3)).reshape(C, B * H * W)
    y0 = _vmem_call(_bn_lrelu_kernel,
                    jax.ShapeDtypeStruct((C, B * H * W), jnp.float32),
                    x_cn, params["g1"], params["b1"])
    y0_nhwc = jnp.transpose(y0.reshape(C, B, H, W), (1, 2, 3, 0))

    # Stage 2: conv1 (k4, s2, p1) as a single im2col GEMM, fused bias + BN2 + LeakyReLU.
    p1, OH1, OW1 = _im2col(y0_nhwc, k=4, stride=2, pad=1)
    z = _vmem_call(_gemm_bn_lrelu_kernel,
                   jax.ShapeDtypeStruct((B * OH1 * OW1, hid), jnp.float32),
                   p1, params["w1col"], params["cb1"], params["g2"], params["b2"])

    # Stage 3: conv2 (k3, s1, p1) as a single im2col GEMM + bias.
    p2, OH2, OW2 = _im2col(z.reshape(B, OH1, OW1, hid), k=3, stride=1, pad=1)
    out = _vmem_call(_gemm_bias_kernel,
                     jax.ShapeDtypeStruct((B * OH2 * OW2, out_nc), jnp.float32),
                     p2, params["w2col"], params["cb2"])
    return jnp.transpose(out.reshape(B, OH2, OW2, out_nc), (0, 3, 1, 2))   # NCHW


class BlockEncoder:
    """Pallas port of BlockEncoder(norm=BatchNorm2d, nonlinearity=LeakyReLU, use_spect=False)."""

    def __init__(self, input_nc, output_nc, hidden_nc, key):
        # The PyTorch module applies norm_layer(output_nc) to conv1's (hidden_nc-channel)
        # output, so it is only well-defined when hidden_nc == output_nc.
        assert hidden_nc == output_nc, "second BatchNorm is norm_layer(output_nc)"
        k1, k2 = jax.random.split(key)
        w1, cb1 = self._conv_init(k1, hidden_nc, input_nc, 4)   # OIHW, PyTorch default init
        w2, cb2 = self._conv_init(k2, output_nc, hidden_nc, 3)
        self.w1_oihw, self.w2_oihw = w1, w2
        self.params = {
            # BatchNorm affine params at PyTorch defaults (weight=1, bias=0)
            "g1": jnp.ones((input_nc, 1), jnp.float32),
            "b1": jnp.zeros((input_nc, 1), jnp.float32),
            "g2": jnp.ones((1, hidden_nc), jnp.float32),
            "b2": jnp.zeros((1, hidden_nc), jnp.float32),
            # conv weights pre-reshaped for im2col GEMM: (O,I,kh,kw) -> (kh,kw,I,O) -> (kh*kw*I, O)
            "w1col": jnp.transpose(w1, (2, 3, 1, 0)).reshape(4 * 4 * input_nc, hidden_nc),
            "cb1": cb1.reshape(1, hidden_nc),
            "w2col": jnp.transpose(w2, (2, 3, 1, 0)).reshape(3 * 3 * hidden_nc, output_nc),
            "cb2": cb2.reshape(1, output_nc),
        }

    @staticmethod
    def _conv_init(key, out_c, in_c, k):
        kw, kb = jax.random.split(key)
        fan_in = in_c * k * k
        bound = 1.0 / float(fan_in) ** 0.5
        w = jax.random.uniform(kw, (out_c, in_c, k, k), jnp.float32, -bound, bound)
        b = jax.random.uniform(kb, (out_c,), jnp.float32, -bound, bound)
        return w, b

    def __call__(self, x):
        return _forward(self.params, x)

    # Pure-JAX/XLA reference (independent conv path) for verification.
    def reference(self, x):
        def bn(v, g, b):
            mean = jnp.mean(v, axis=(0, 2, 3), keepdims=True)
            var = jnp.mean((v - mean) ** 2, axis=(0, 2, 3), keepdims=True)
            return ((v - mean) * jax.lax.rsqrt(var + _EPS)
                    * g[None, :, None, None] + b[None, :, None, None])

        g1 = self.params["g1"][:, 0]; b1 = self.params["b1"][:, 0]
        g2 = self.params["g2"][0];    b2 = self.params["b2"][0]
        y = _leaky(bn(x, g1, b1))
        y = jax.lax.conv_general_dilated(
            y, self.w1_oihw, (2, 2), ((1, 1), (1, 1)),
            dimension_numbers=("NCHW", "OIHW", "NCHW"),
            precision=jax.lax.Precision.HIGHEST) + self.params["cb1"][0][None, :, None, None]
        y = _leaky(bn(y, g2, b2))
        y = jax.lax.conv_general_dilated(
            y, self.w2_oihw, (1, 1), ((1, 1), (1, 1)),
            dimension_numbers=("NCHW", "OIHW", "NCHW"),
            precision=jax.lax.Precision.HIGHEST) + self.params["cb2"][0][None, :, None, None]
        return y


if __name__ == "__main__":
    B, input_nc, H, W = 2, 4, 16, 16
    hidden_nc = output_nc = 32

    key = jax.random.PRNGKey(0)
    kx, kp = jax.random.split(key)
    x = jax.random.normal(kx, (B, input_nc, H, W), jnp.float32)

    model = BlockEncoder(input_nc, output_nc, hidden_nc, kp)
    out = jax.block_until_ready(model(x))

    ref = model.reference(x)
    assert out.shape == (B, output_nc, H // 2, W // 2), out.shape
    assert jnp.allclose(out, ref, atol=1e-3, rtol=1e-3), float(jnp.max(jnp.abs(out - ref)))

    print("KERNEL_OK")
</pallas_src>

<mosaic_0001>
module attributes {stable_mosaic.version = 11 : i64} {
  func.func @_bn_lrelu_kernel(%arg0: memref<4x512xf32, #tpu.memory_space<vmem>>, %arg1: memref<4x1xf32, #tpu.memory_space<vmem>>, %arg2: memref<4x1xf32, #tpu.memory_space<vmem>>, %arg3: memref<4x512xf32, #tpu.memory_space<vmem>>) attributes {dimension_semantics = [], scalar_prefetch = 0 : i64, scratch_operands = 0 : i64, tpu.core_type = #tpu.core_type<tc>} {
    %c0 = arith.constant 0 : index
    %c0_0 = arith.constant 0 : index
    %0 = vector.load %arg0[%c0, %c0_0] : memref<4x512xf32, #tpu.memory_space<vmem>>, vector<4x512xf32>
    %cst = arith.constant dense<0.000000e+00> : vector<4xf32>
    %1 = vector.multi_reduction <add>, %0, %cst [1] : vector<4x512xf32> to vector<4xf32>
    %2 = vector.shape_cast %1 : vector<4xf32> to vector<4x1xf32>
    %cst_1 = arith.constant 5.120000e+02 : f32
    %3 = vector.broadcast %cst_1 : f32 to vector<4x1xf32>
    %4 = arith.divf %2, %3 : vector<4x1xf32>
    %5 = vector.broadcast %4 : vector<4x1xf32> to vector<4x512xf32>
    %6 = arith.subf %0, %5 : vector<4x512xf32>
    %7 = arith.mulf %6, %6 : vector<4x512xf32>
    %cst_2 = arith.constant dense<0.000000e+00> : vector<4xf32>
    %8 = vector.multi_reduction <add>, %7, %cst_2 [1] : vector<4x512xf32> to vector<4xf32>
    %9 = vector.shape_cast %8 : vector<4xf32> to vector<4x1xf32>
    %cst_3 = arith.constant 5.120000e+02 : f32
    %10 = vector.broadcast %cst_3 : f32 to vector<4x1xf32>
    %11 = arith.divf %9, %10 : vector<4x1xf32>
    %12 = vector.broadcast %4 : vector<4x1xf32> to vector<4x512xf32>
    %13 = arith.subf %0, %12 : vector<4x512xf32>
    %cst_4 = arith.constant 9.99999974E-6 : f32
    %14 = vector.broadcast %cst_4 : f32 to vector<4x1xf32>
    %15 = arith.addf %11, %14 : vector<4x1xf32>
    %16 = math.rsqrt %15 : vector<4x1xf32>
    %17 = vector.broadcast %16 : vector<4x1xf32> to vector<4x512xf32>
    %18 = arith.mulf %13, %17 : vector<4x512xf32>
    %c0_5 = arith.constant 0 : index
    %c0_6 = arith.constant 0 : index
    %19 = vector.load %arg1[%c0_5, %c0_6] : memref<4x1xf32, #tpu.memory_space<vmem>>, vector<4x1xf32>
    %20 = vector.broadcast %19 : vector<4x1xf32> to vector<4x512xf32>
    %21 = arith.mulf %18, %20 : vector<4x512xf32>
    %c0_7 = arith.constant 0 : index
    %c0_8 = arith.constant 0 : index
    %22 = vector.load %arg2[%c0_7, %c0_8] : memref<4x1xf32, #tpu.memory_space<vmem>>, vector<4x1xf32>
    %23 = vector.broadcast %22 : vector<4x1xf32> to vector<4x512xf32>
    %24 = arith.addf %21, %23 : vector<4x512xf32>
    %cst_9 = arith.constant 0.000000e+00 : f32
    %25 = vector.broadcast %cst_9 : f32 to vector<4x512xf32>
    %26 = arith.cmpf ogt, %24, %25 : vector<4x512xf32>
    %cst_10 = arith.constant 0.00999999977 : f32
    %27 = vector.broadcast %cst_10 : f32 to vector<4x512xf32>
    %28 = arith.mulf %27, %24 : vector<4x512xf32>
    %29 = arith.select %26, %24, %28 : vector<4x512xi1>, vector<4x512xf32>
    %c0_11 = arith.constant 0 : index
    %c0_12 = arith.constant 0 : index
    %30 = vector.load %arg3[%c0_11, %c0_12] : memref<4x512xf32, #tpu.memory_space<vmem>>, vector<4x512xf32>
    tpu.vector_store %arg3[%c0_11, %c0_12], %29 {strides = array<i32>} : memref<4x512xf32, #tpu.memory_space<vmem>>, vector<4x512xf32>,
    return
  }
}

module attributes {stable_mosaic.version = 11 : i64} {
  func.func @_gemm_bn_lrelu_kernel(%arg0: memref<128x64xf32, #tpu.memory_space<vmem>>, %arg1: memref<64x32xf32, #tpu.memory_space<vmem>>, %arg2: memref<1x32xf32, #tpu.memory_space<vmem>>, %arg3: memref<1x32xf32, #tpu.memory_space<vmem>>, %arg4: memref<1x32xf32, #tpu.memory_space<vmem>>, %arg5: memref<128x32xf32, #tpu.memory_space<vmem>>) attributes {dimension_semantics = [], scalar_prefetch = 0 : i64, scratch_operands = 0 : i64, tpu.core_type = #tpu.core_type<tc>} {
    %c0 = arith.constant 0 : index
    %c0_0 = arith.constant 0 : index
    %0 = vector.load %arg0[%c0, %c0_0] : memref<128x64xf32, #tpu.memory_space<vmem>>, vector<128x64xf32>
    %c0_1 = arith.constant 0 : index
    %c0_2 = arith.constant 0 : index
    %1 = vector.load %arg1[%c0_1, %c0_2] : memref<64x32xf32, #tpu.memory_space<vmem>>, vector<64x32xf32>
    %cst = arith.constant dense<0.000000e+00> : vector<128x32xf32>
    %2 = tpu.matmul %0, %1, %cst {dimension_numbers = #tpu.dot_dimension_numbers<[1], [0], [0], [1], [0, 0, 1, 1], [], []>} : vector<128x64xf32>, vector<64x32xf32>, vector<128x32xf32> -> vector<128x32xf32>
    %c0_3 = arith.constant 0 : index
    %c0_4 = arith.constant 0 : index
    %3 = vector.load %arg2[%c0_3, %c0_4] : memref<1x32xf32, #tpu.memory_space<vmem>>, vector<1x32xf32>
    %4 = vector.broadcast %3 : vector<1x32xf32> to vector<128x32xf32>
    %5 = arith.addf %2, %4 : vector<128x32xf32>
    %cst_5 = arith.constant dense<0.000000e+00> : vector<32xf32>
    %6 = vector.multi_reduction <add>, %5, %cst_5 [0] : vector<128x32xf32> to vector<32xf32>
    %7 = vector.shape_cast %6 : vector<32xf32> to vector<1x32xf32>
    %cst_6 = arith.constant 1.280000e+02 : f32
    %8 = vector.broadcast %cst_6 : f32 to vector<1x32xf32>
    %9 = arith.divf %7, %8 : vector<1x32xf32>
    %10 = vector.broadcast %9 : vector<1x32xf32> to vector<128x32xf32>
    %11 = arith.subf %5, %10 : vector<128x32xf32>
    %12 = arith.mulf %11, %11 : vector<128x32xf32>
    %cst_7 = arith.constant dense<0.000000e+00> : vector<32xf32>
    %13 = vector.multi_reduction <add>, %12, %cst_7 [0] : vector<128x32xf32> to vector<32xf32>
    %14 = vector.shape_cast %13 : vector<32xf32> to vector<1x32xf32>
    %cst_8 = arith.constant 1.280000e+02 : f32
    %15 = vector.broadcast %cst_8 : f32 to vector<1x32xf32>
    %16 = arith.divf %14, %15 : vector<1x32xf32>
    %17 = vector.broadcast %9 : vector<1x32xf32> to vector<128x32xf32>
    %18 = arith.subf %5, %17 : vector<128x32xf32>
    %cst_9 = arith.constant 9.99999974E-6 : f32
    %19 = vector.broadcast %cst_9 : f32 to vector<1x32xf32>
    %20 = arith.addf %16, %19 : vector<1x32xf32>
    %21 = math.rsqrt %20 : vector<1x32xf32>
    %22 = vector.broadcast %21 : vector<1x32xf32> to vector<128x32xf32>
    %23 = arith.mulf %18, %22 : vector<128x32xf32>
    %c0_10 = arith.constant 0 : index
    %c0_11 = arith.constant 0 : index
    %24 = vector.load %arg3[%c0_10, %c0_11] : memref<1x32xf32, #tpu.memory_space<vmem>>, vector<1x32xf32>
    %25 = vector.broadcast %24 : vector<1x32xf32> to vector<128x32xf32>
    %26 = arith.mulf %23, %25 : vector<128x32xf32>
    %c0_12 = arith.constant 0 : index
    %c0_13 = arith.constant 0 : index
    %27 = vector.load %arg4[%c0_12, %c0_13] : memref<1x32xf32, #tpu.memory_space<vmem>>, vector<1x32xf32>
    %28 = vector.broadcast %27 : vector<1x32xf32> to vector<128x32xf32>
    %29 = arith.addf %26, %28 : vector<128x32xf32>
    %cst_14 = arith.constant 0.000000e+00 : f32
    %30 = vector.broadcast %cst_14 : f32 to vector<128x32xf32>
    %31 = arith.cmpf ogt, %29, %30 : vector<128x32xf32>
    %cst_15 = arith.constant 0.00999999977 : f32
    %32 = vector.broadcast %cst_15 : f32 to vector<128x32xf32>
    %33 = arith.mulf %32, %29 : vector<128x32xf32>
    %34 = arith.select %31, %29, %33 : vector<128x32xi1>, vector<128x32xf32>
    %c0_16 = arith.constant 0 : index
    %c0_17 = arith.constant 0 : index
    %35 = vector.load %arg5[%c0_16, %c0_17] : memref<128x32xf32, #tpu.memory_space<vmem>>, vector<128x32xf32>
    tpu.vector_store %arg5[%c0_16, %c0_17], %34 {strides = array<i32>} : memref<128x32xf32, #tpu.memory_space<vmem>>, vector<128x32xf32>,
    return
  }
}

module attributes {stable_mosaic.version = 11 : i64} {
  func.func @_gemm_bias_kernel(%arg0: memref<128x288xf32, #tpu.memory_space<vmem>>, %arg1: memref<288x32xf32, #tpu.memory_space<vmem>>, %arg2: memref<1x32xf32, #tpu.memory_space<vmem>>, %arg3: memref<128x32xf32, #tpu.memory_space<vmem>>) attributes {dimension_semantics = [], scalar_prefetch = 0 : i64, scratch_operands = 0 : i64, tpu.core_type = #tpu.core_type<tc>} {
    %c0 = arith.constant 0 : index
    %c0_0 = arith.constant 0 : index
    %0 = vector.load %arg0[%c0, %c0_0] : memref<128x288xf32, #tpu.memory_space<vmem>>, vector<128x288xf32>
    %c0_1 = arith.constant 0 : index
    %c0_2 = arith.constant 0 : index
    %1 = vector.load %arg1[%c0_1, %c0_2] : memref<288x32xf32, #tpu.memory_space<vmem>>, vector<288x32xf32>
    %cst = arith.constant dense<0.000000e+00> : vector<128x32xf32>
    %2 = tpu.matmul %0, %1, %cst {dimension_numbers = #tpu.dot_dimension_numbers<[1], [0], [0], [1], [0, 0, 1, 1], [], []>} : vector<128x288xf32>, vector<288x32xf32>, vector<128x32xf32> -> vector<128x32xf32>
    %c0_3 = arith.constant 0 : index
    %c0_4 = arith.constant 0 : index
    %3 = vector.load %arg2[%c0_3, %c0_4] : memref<1x32xf32, #tpu.memory_space<vmem>>, vector<1x32xf32>
    %4 = vector.broadcast %3 : vector<1x32xf32> to vector<128x32xf32>
    %5 = arith.addf %2, %4 : vector<128x32xf32>
    %c0_5 = arith.constant 0 : index
    %c0_6 = arith.constant 0 : index
    %6 = vector.load %arg3[%c0_5, %c0_6] : memref<128x32xf32, #tpu.memory_space<vmem>>, vector<128x32xf32>
    tpu.vector_store %arg3[%c0_5, %c0_6], %5 {strides = array<i32>} : memref<128x32xf32, #tpu.memory_space<vmem>>, vector<128x32xf32>,
    return
  }
}

</mosaic_0001>

<bundles_post_ra>
// kernel: _forward.3
= control target key start
LH: loop header
LB: loop body
LE: loop exit
PB: predicated region body
PF: predicated region fallthrough
CT: control target
= control target key end

     0   :  { %vm29_vm0 = vcmask 1043456   ;;  %v144_v13 = vmov 512.0   ;;  %v145_v20 = vmov 0   ;;  %v146_v21 = vmov 839922192   ;;  %s193_s0 = inlined_call_operand.vmem [shape: f32[4,512], index: 0, kind: input, shape index: {}]   ;;  %s194_s1 = inlined_call_operand.vmem [shape: f32[4,1], index: 1, kind: input, shape index: {}]   ;;  %s195_s2 = inlined_call_operand.vmem [shape: f32[4,1], index: 2, kind: input, shape index: {}]   ;;  %s196_s3 = inlined_call_operand.vmem [shape: f32[4,512], index: 3, kind: output, shape index: {}]  }
   0x1   :  { %v14_v0 = vld [vmem:[%s193_s0] sm:$0xff]  ;;  %v15_v1 = vld [vmem:[%s193_s0 + $0x8] sm:$0xff]  ;;  %140 = vrcp.f32 %v144_v13  ;;  %138 = vset.pattern.permute.xlu1 %v145_v20  ;;  %139 = vset.pattern.permute.xlu0 %v145_v20  ;;  %v49_v22 = vunpack.c.l.s4 %v146_v21 }
   0x2   :  { %18 = vst [vmem:[#allocation1] ss:$2 sm:$0xff] %v14_v0  ;;  %v99_v18 = vld [vmem:[%s194_s1] sm:$0xf] }
   0x3   :  { %20 = vst [vmem:[#allocation1 + $0x10] ss:$2 sm:$0xff] %v15_v1  ;;  %102 = vperm.xlu1 %138, %v99_v18   ;;  %v50_v24 = vunpack.c.0.s8 %v49_v22  ;;  %v111_v26 = vld [vmem:[%s195_s2] sm:$0xf] }
   0x7   :  { %v141_v14 = vpop.eup %140 }
   0x8   :  { %v40_v15 = vmul.f32 512.0, %v141_v14  ;;  %vm44_vm1 = vweird.f32 %v141_v14 }
   0x9   :  { %v21_v2 = vld.sshfl [vmem:[#allocation1] sm:$0xff pattern:$0x75316420]  ;;  %v22_v3 = vld.sshfl [vmem:[#allocation1 + $0x8] sm:$0xff pattern:$0x75316420] }
   0xa   :  { %v23_v4 = vld.sshfl [vmem:[#allocation1 + $0x10] sm:$0xff pattern:$0x75316420]  ;;  %v24_v5 = vld.sshfl [vmem:[#allocation1 + $0x18] sm:$0xff pattern:$0x75316420] }
   0xb   :  { %v30_v6 = vsel %vm29_vm0, %v21_v2, 0.0  ;;  %v31_v7 = vsel %vm29_vm0, %v22_v3, 0.0  ;;  %v33_v8 = vsel %vm29_vm0, %v23_v4, 0.0  ;;  %v35_v10 = vsel %vm29_vm0, %v24_v5, 0.0  ;;  %114 = vperm.xlu1 %138, %v111_v26  }
   0xc   :  { %v32_v9 = vadd.f32 %v31_v7, %v30_v6  ;;  %v41_v16 = vsub.f32 1.0, %v40_v15 }
   0xe   :  { %v34_v11 = vadd.f32 %v33_v8, %v32_v9  ;;  %v42_v17 = vmul.f32 %v141_v14, %v41_v16 }
  0x10   :  { %v36_v12 = vadd.f32 %v35_v10, %v34_v11  ;;  %v43_v19 = vadd.f32 %v141_v14, %v42_v17 }
  0x12   :  { %37 = vadd.xlane.f32.xlu0 %v36_v12  ;;  %v45_v23 = vsel %vm44_vm1, %v141_v14, %v43_v19 }
  0x75   :  { %v103_v50 = vpop.permute.xlu1 %102 }
  0x76   :  { %v107_v59 = vperm.slane %v103_v50, %v50_v24 }
  0x7d   :  { %v115_v56 = vpop.permute.xlu1 %114 }
  0x7e   :  { %v119_v62 = vperm.slane %v115_v56, %v50_v24 }
  0x85   :  { %v38_v25 = vpop.xlane.xlu0 %37 }
  0x86   :  { %v46_v27 = vmul.f32 %v45_v23, %v38_v25 }
  0x88   :  { %v51_v28 = vperm.slane %v46_v27, %v50_v24 }
  0x8a   :  { %v53_v29 = vsub.f32 %v14_v0, %v51_v28  ;;  %v54_v30 = vsub.f32 %v15_v1, %v51_v28 }
  0x8c   :  { %v55_v31 = vmul.f32 %v53_v29, %v53_v29  ;;  %v56_v32 = vmul.f32 %v54_v30, %v54_v30 }
  0x8e   :  { %59 = vst [vmem:[#allocation1] ss:$2 sm:$0xff] %v55_v31 }
  0x8f   :  { %61 = vst [vmem:[#allocation1 + $0x10] ss:$2 sm:$0xff] %v56_v32 }
  0x95   :  { %v62_v33 = vld.sshfl [vmem:[#allocation1] sm:$0xff pattern:$0x75316420]  ;;  %v63_v34 = vld.sshfl [vmem:[#allocation1 + $0x8] sm:$0xff pattern:$0x75316420] }
  0x96   :  { %v64_v35 = vld.sshfl [vmem:[#allocation1 + $0x10] sm:$0xff pattern:$0x75316420]  ;;  %v70_v36 = vsel %vm29_vm0, %v62_v33, 0.0  ;;  %v71_v37 = vsel %vm29_vm0, %v63_v34, 0.0 }
  0x97   :  { %v65_v38 = vld.sshfl [vmem:[#allocation1 + $0x18] sm:$0xff pattern:$0x75316420]  ;;  %v72_v39 = vadd.f32 %v71_v37, %v70_v36  ;;  %v73_v40 = vsel %vm29_vm0, %v64_v35, 0.0 }
  0x98   :  { %v75_v42 = vsel %vm29_vm0, %v65_v38, 0.0 }
  0x99   :  { %v74_v41 = vadd.f32 %v73_v40, %v72_v39 }
  0x9b   :  { %v76_v43 = vadd.f32 %v75_v42, %v74_v41 }
  0x9d   :  { %77 = vadd.xlane.f32.xlu0 %v76_v43 }
 0x110   :  { %v78_v44 = vpop.xlane.xlu0 %77 }
 0x111   :  { %v79_v45 = vmul.f32 %v78_v44, %v45_v23 }
 0x113   :  { %v80_v46 = vadd.f32 1e-05, %v79_v45 }
 0x115   :  { %142 = vrsqrt.f32 %v80_v46  ;;  %vm87_vm3 = vweird.f32 %v80_v46 }
 0x11b   :  { %v143_v47 = vpop.eup %142 }
 0x11c   :  { %v82_v48 = vmul.f32 %v143_v47, %v80_v46  ;;  %vm88_vm2 = vweird.f32 %v143_v47 }
 0x11d   :  { %vm89_vm4 = vmor %vm87_vm3, %vm88_vm2 }
 0x11e   :  { %v83_v49 = vmul.f32 %v143_v47, %v82_v48 }
 0x120   :  { %v84_v51 = vmul.f32 0.5, %v83_v49 }
 0x122   :  { %v85_v52 = vsub.f32 1.5, %v84_v51 }
 0x124   :  { %v86_v53 = vmul.f32 %v143_v47, %v85_v52 }
 0x126   :  { %v90_v54 = vsel %vm89_vm4, %v143_v47, %v86_v53 }
 0x127   :  { %v95_v55 = vperm.slane %v90_v54, %v50_v24 }
 0x129   :  { %v97_v57 = vmul.f32 %v95_v55, %v53_v29  ;;  %v98_v58 = vmul.f32 %v95_v55, %v54_v30 }
 0x12b   :  { %v109_v60 = vmul.f32 %v107_v59, %v97_v57  ;;  %v110_v61 = vmul.f32 %v107_v59, %v98_v58 }
 0x12d   :  { %v121_v63 = vadd.f32 %v119_v62, %v109_v60  ;;  %v122_v0 = vadd.f32 %v119_v62, %v110_v61 }
 0x12f   :  { %vm123_vm5 = vcmp.gt.f32.partialorder %v121_v63, 0.0  ;;  %vm124_vm6 = vcmp.gt.f32.partialorder %v122_v0, 0.0  ;;  %v125_v1 = vmul.f32 0.01, %v121_v63  ;;  %v126_v2 = vmul.f32 0.01, %v122_v0 }
 0x131   :  { %v127_v3 = vsel %vm123_vm5, %v121_v63, %v125_v1  ;;  %v128_v4 = vsel %vm124_vm6, %v122_v0, %v126_v2 }
 0x132   :  { %129 = vst [vmem:[%s196_s3] sm:$0xff] %v127_v3 }
 0x133   :  { %130 = vst [vmem:[%s196_s3 + $0x8] sm:$0xff] %v128_v4 }

// kernel: _forward.4
= control target key start
LH: loop header
LB: loop body
LE: loop exit
PB: predicated region body
PF: predicated region fallthrough
CT: control target
= control target key end

     0   :  { %vm48_vm0 = vcmask 523264   ;;  %vm162_vm1 = vcmask 261120   ;;  %s841_s1 = inlined_call_operand.vmem [shape: f32[64,32], index: 1, kind: input, shape index: {}]   ;;  %s842_s2 = inlined_call_operand.vmem [shape: f32[1,32], index: 2, kind: input, shape index: {}]   ;;  %s843_s0 = inlined_call_operand.vmem [shape: f32[128,64], index: 0, kind: input, shape index: {}]   ;;  %s844_s3 = inlined_call_operand.vmem [shape: f32[1,32], index: 3, kind: input, shape index: {}]   ;;  %s845_s4 = inlined_call_operand.vmem [shape: f32[1,32], index: 4, kind: input, shape index: {}]   ;;  %s846_s5 = inlined_call_operand.vmem [shape: f32[128,32], index: 5, kind: output, shape index: {}]  }
   0x1   :  { %v43_v0 = vld [vmem:[%s841_s1 + $0x38] sm:$0xff]  ;;  %v42_v1 = vld [vmem:[%s841_s1 + $0x30] sm:$0xff]  ;;  %v41_v2 = vld [vmem:[%s841_s1 + $0x28] sm:$0xff] }
   0x2   :  { %105 = vmatpush.msra.mxu0 %v43_v0  ;;  %429 = vmatpush.msra.mxu1 %v43_v0  ;;  %v40_v3 = vld [vmem:[%s841_s1 + $0x20] sm:$0xff]  ;;  %v39_v4 = vld [vmem:[%s841_s1 + $0x18] sm:$0xff]  ;;  %v38_v5 = vld [vmem:[%s841_s1 + $0x10] sm:$0xff] }
   0x3   :  { %430 = vmatpush.msra.mxu2 %v43_v0  ;;  %431 = vmatpush.msra.mxu3 %v43_v0  ;;  %v37_v6 = vld [vmem:[%s841_s1 + $0x8] sm:$0xff]  ;;  %v36_v7 = vld [vmem:[%s841_s1] sm:$0xff]  ;;  %v22_v16 = vld [vmem:[%s843_s0 + $0x10] sm:$0xff] }
   0x4   :  { %106 = vmatpush.msra.mxu0 %v42_v1  ;;  %432 = vmatpush.msra.mxu1 %v42_v1  ;;  %v20_v8 = vld [vmem:[%s843_s0] sm:$0xff]  ;;  %v21_v12 = vld [vmem:[%s843_s0 + $0x8] sm:$0xff]  ;;  %v26_v17 = vld [vmem:[%s843_s0 + $0x30] sm:$0xff] }
   0x5   :  { %433 = vmatpush.msra.mxu2 %v42_v1  ;;  %434 = vmatpush.msra.mxu3 %v42_v1  ;;  %v24_v9 = vld [vmem:[%s843_s0 + $0x20] sm:$0xff]  ;;  %v25_v13 = vld [vmem:[%s843_s0 + $0x28] sm:$0xff]  ;;  %v30_v18 = vld [vmem:[%s843_s0 + $0x50] sm:$0xff] }
   0x6   :  { %107 = vmatpush.msra.mxu0 %v41_v2  ;;  %435 = vmatpush.msra.mxu1 %v41_v2  ;;  %v28_v10 = vld [vmem:[%s843_s0 + $0x40] sm:$0xff]  ;;  %v29_v14 = vld [vmem:[%s843_s0 + $0x48] sm:$0xff]  ;;  %v34_v19 = vld [vmem:[%s843_s0 + $0x70] sm:$0xff] }
   0x7   :  { %436 = vmatpush.msra.mxu2 %v41_v2  ;;  %437 = vmatpush.msra.mxu3 %v41_v2  ;;  %v32_v11 = vld [vmem:[%s843_s0 + $0x60] sm:$0xff]  ;;  %v33_v15 = vld [vmem:[%s843_s0 + $0x68] sm:$0xff]  ;;  %v23_v20 = vld [vmem:[%s843_s0 + $0x18] sm:$0xff] }
   0x8   :  { %108 = vmatpush.msra.mxu0 %v40_v3  ;;  %438 = vmatpush.msra.mxu1 %v40_v3  ;;  %v27_v21 = vld [vmem:[%s843_s0 + $0x38] sm:$0xff]  ;;  %v454_v30 = vld [vmem:[%s842_s2] ss:$0 sm:$0xff] }
   0x9   :  { %439 = vmatpush.msra.mxu2 %v40_v3  ;;  %440 = vmatpush.msra.mxu3 %v40_v3  ;;  %v31_v22 = vld [vmem:[%s843_s0 + $0x58] sm:$0xff] }
   0xa   :  { %109 = vmatpush.msra.mxu0 %v39_v4  ;;  %441 = vmatpush.msra.mxu1 %v39_v4  ;;  %v35_v23 = vld [vmem:[%s843_s0 + $0x78] sm:$0xff] }
   0xb   :  { %442 = vmatpush.msra.mxu2 %v39_v4  ;;  %443 = vmatpush.msra.mxu3 %v39_v4 }
   0xc   :  { %110 = vmatpush.msra.mxu0 %v38_v5  ;;  %444 = vmatpush.msra.mxu1 %v38_v5 }
   0xd   :  { %445 = vmatpush.msra.mxu2 %v38_v5  ;;  %446 = vmatpush.msra.mxu3 %v38_v5  ;;  %v461_v5 = vmov 128.0  }
   0xe   :  { %111 = vmatpush.msra.mxu0 %v37_v6  ;;  %447 = vmatpush.msra.mxu1 %v37_v6  ;;  %457 = vrcp.f32 %v461_v5 }
   0xf   :  { %448 = vmatpush.msra.mxu2 %v37_v6  ;;  %449 = vmatpush.msra.mxu3 %v37_v6 }
  0x10   :  { %112 = vmatpush.msra.mxu0 %v36_v7  ;;  %450 = vmatpush.msra.mxu1 %v36_v7 }
  0x11   :  { %413 = vmatmul.msk.f32.vlgmr.msra.gmra.mxu0 %vm48_vm0, %v20_v8  ;;  %417 = vmatmul.msk.f32.vlgmr.msra.gmra.mxu1 %vm48_vm0, %v24_v9 }
  0x12   :  { %451 = vmatpush.msra.mxu2 %v36_v7  ;;  %452 = vmatpush.msra.mxu3 %v36_v7 }
  0x13   :  { %421 = vmatmul.msk.f32.vlgmr.msra.gmra.mxu2 %vm48_vm0, %v28_v10  ;;  %425 = vmatmul.msk.f32.vlgmr.msra.gmra.mxu3 %vm48_vm0, %v32_v11 }
  0x19   :  { %414 = vmatmul.msk.f32.gmra.mxu0 %vm48_vm0, %v21_v12  ;;  %418 = vmatmul.msk.f32.gmra.mxu1 %vm48_vm0, %v25_v13 }
  0x1b   :  { %422 = vmatmul.msk.f32.gmra.mxu2 %vm48_vm0, %v29_v14  ;;  %426 = vmatmul.msk.f32.gmra.mxu3 %vm48_vm0, %v33_v15  ;;  %v458_v14 = vpop.eup %457 }
  0x1c   :  { %vm205_vm2 = vweird.f32 %v458_v14 }
  0x21   :  { %415 = vmatmul.msk.f32.gmra.mxu0 %vm48_vm0, %v22_v16  ;;  %419 = vmatmul.msk.f32.gmra.mxu1 %vm48_vm0, %v26_v17 }
  0x23   :  { %423 = vmatmul.msk.f32.gmra.mxu2 %vm48_vm0, %v30_v18  ;;  %427 = vmatmul.msk.f32.gmra.mxu3 %vm48_vm0, %v34_v19 }
  0x29   :  { %416 = vmatmul.msk.f32.gmra.mxu0 %vm48_vm0, %v23_v20  ;;  %420 = vmatmul.msk.f32.gmra.mxu1 %vm48_vm0, %v27_v21  ;;  %v201_v21 = vmul.f32 128.0, %v458_v14 }
  0x2b   :  { %424 = vmatmul.msk.f32.gmra.mxu2 %vm48_vm0, %v31_v22  ;;  %428 = vmatmul.msk.f32.gmra.mxu3 %vm48_vm0, %v35_v23 }
  0x8e   :  { %v114_v24 = vpop.f32.mrf.mxu0  ;;  %v126_v25 = vpop.f32.mrf.mxu1 }
  0x8f   :  { %v585_v35 = vadd.f32 %v454_v30, %v114_v24  ;;  %v595_v43 = vadd.f32 %v454_v30, %v126_v25 }
  0x91   :  { %v163_v39 = vsel %vm162_vm1, %v585_v35, 0.0  ;;  %v170_v51 = vsel %vm162_vm1, %v595_v43, 0.0 }
  0x96   :  { %v117_v26 = vpop.f32.mrf.mxu0  ;;  %v129_v27 = vpop.f32.mrf.mxu1 }
  0x97   :  { %v138_v28 = vpop.f32.mrf.mxu2  ;;  %v150_v29 = vpop.f32.mrf.mxu3  ;;  %v583_v33 = vadd.f32 %v454_v30, %v117_v26  ;;  %v599_v48 = vadd.f32 %v454_v30, %v129_v27  ;;  %v202_v26 = vsub.f32 1.0, %v201_v21 }
  0x98   :  { %v611_v58 = vadd.f32 %v454_v30, %v138_v28  ;;  %v627_v8 = vadd.f32 %v454_v30, %v150_v29 }
  0x99   :  { %v164_v37 = vsel %vm162_vm1, %v583_v33, 0.0  ;;  %v172_v55 = vsel %vm162_vm1, %v599_v48, 0.0  ;;  %v203_v29 = vmul.f32 %v458_v14, %v202_v26 }
  0x9a   :  { %v165_v41 = vadd.f32 %v164_v37, %v163_v39  ;;  %v178_v1 = vsel %vm162_vm1, %v611_v58, 0.0  ;;  %v186_v16 = vsel %vm162_vm1, %v627_v8, 0.0 }
  0x9e   :  { %v120_v31 = vpop.f32.mrf.mxu0  ;;  %v132_v32 = vpop.f32.mrf.mxu1 }
  0x9f   :  { %v141_v34 = vpop.f32.mrf.mxu2  ;;  %v587_v36 = vadd.f32 %v454_v30, %v120_v31  ;;  %v153_v38 = vpop.f32.mrf.mxu3  ;;  %v605_v52 = vadd.f32 %v454_v30, %v132_v32  ;;  %v204_v32 = vadd.f32 %v458_v14, %v203_v29 }
  0xa0   :  { %v617_v63 = vadd.f32 %v454_v30, %v141_v34  ;;  %v633_v13 = vadd.f32 %v454_v30, %v153_v38 }
  0xa1   :  { %v166_v40 = vsel %vm162_vm1, %v587_v36, 0.0  ;;  %v174_v59 = vsel %vm162_vm1, %v605_v52, 0.0  ;;  %v647_v38 = vsel %vm205_vm2, %v458_v14, %v204_v32 }
  0xa2   :  { %v167_v46 = vadd.f32 %v166_v40, %v165_v41  ;;  %v180_v6 = vsel %vm162_vm1, %v617_v63, 0.0  ;;  %v188_v20 = vsel %vm162_vm1, %v633_v13, 0.0 }
  0xa6   :  { %v123_v42 = vpop.f32.mrf.mxu0  ;;  %v135_v47 = vpop.f32.mrf.mxu1 }
  0xa7   :  { %v597_v44 = vadd.f32 %v454_v30, %v123_v42  ;;  %v144_v45 = vpop.f32.mrf.mxu2  ;;  %v607_v53 = vadd.f32 %v454_v30, %v135_v47  ;;  %v156_v57 = vpop.f32.mrf.mxu3 }
  0xa8   :  { %v621_v2 = vadd.f32 %v454_v30, %v144_v45  ;;  %v637_v17 = vadd.f32 %v454_v30, %v156_v57 }
  0xa9   :  { %v168_v49 = vsel %vm162_vm1, %v597_v44, 0.0  ;;  %v176_v60 = vsel %vm162_vm1, %v607_v53, 0.0 }
  0xaa   :  { %v169_v50 = vadd.f32 %v168_v49, %v167_v46  ;;  %v182_v9 = vsel %vm162_vm1, %v621_v2, 0.0  ;;  %v190_v23 = vsel %vm162_vm1, %v637_v17, 0.0 }
  0xac   :  { %v171_v54 = vadd.f32 %v170_v51, %v169_v50 }
  0xae   :  { %v173_v56 = vadd.f32 %v172_v55, %v171_v54 }
  0xaf   :  { %v147_v62 = vpop.f32.mrf.mxu2  ;;  %v159_v12 = vpop.f32.mrf.mxu3 }
  0xb0   :  { %v175_v61 = vadd.f32 %v174_v59, %v173_v56  ;;  %v623_v3 = vadd.f32 %v454_v30, %v147_v62  ;;  %v639_v18 = vadd.f32 %v454_v30, %v159_v12 }
  0xb2   :  { %v177_v0 = vadd.f32 %v176_v60, %v175_v61  ;;  %v184_v10 = vsel %vm162_vm1, %v623_v3, 0.0  ;;  %v192_v24 = vsel %vm162_vm1, %v639_v18, 0.0 }
  0xb4   :  { %v179_v4 = vadd.f32 %v178_v1, %v177_v0 }
  0xb6   :  { %v181_v7 = vadd.f32 %v180_v6, %v179_v4 }
  0xb8   :  { %v183_v11 = vadd.f32 %v182_v9, %v181_v7 }
  0xba   :  { %v185_v15 = vadd.f32 %v184_v10, %v183_v11 }
  0xbc   :  { %v187_v19 = vadd.f32 %v186_v16, %v185_v15 }
  0xbe   :  { %v189_v22 = vadd.f32 %v188_v20, %v187_v19 }
  0xc0   :  { %v191_v25 = vadd.f32 %v190_v23, %v189_v22 }
  0xc2   :  { %v193_v27 = vadd.f32 %v192_v24, %v191_v25 }
  0xc4   :  { %v194_v28 = vrot.slane %v193_v27, 4 }
  0xc6   :  { %v195_v31 = vadd.f32 %v194_v28, %v193_v27 }
  0xc8   :  { %v196_v30 = vrot.slane %v195_v31, 2 }
  0xca   :  { %v197_v34 = vadd.f32 %v196_v30, %v195_v31 }
  0xcc   :  { %v198_v37 = vrot.slane %v197_v34, 1 }
  0xce   :  { %v199_v39 = vadd.f32 %v198_v37, %v197_v34 }
  0xd0   :  { %v207_v40 = vmul.f32 %v647_v38, %v199_v39 }
  0xd2   :  { %v651_v41 = vsub.f32 %v585_v35, %v207_v40  ;;  %v654_v42 = vsub.f32 %v583_v33, %v207_v40  ;;  %v657_v45 = vsub.f32 %v587_v36, %v207_v40  ;;  %v660_v46 = vsub.f32 %v597_v44, %v207_v40 }
  0xd3   :  { %v667_v50 = vsub.f32 %v595_v43, %v207_v40  ;;  %v672_v33 = vsub.f32 %v599_v48, %v207_v40  ;;  %v679_v55 = vsub.f32 %v605_v52, %v207_v40  ;;  %v685_v48 = vsub.f32 %v607_v53, %v207_v40 }
  0xd4   :  { %v224_v47 = vmul.f32 %v651_v41, %v651_v41  ;;  %v225_v49 = vmul.f32 %v654_v42, %v654_v42  ;;  %v226_v35 = vmul.f32 %v657_v45, %v657_v45  ;;  %v227_v36 = vmul.f32 %v660_v46, %v660_v46 }
  0xd5   :  { %v228_v43 = vmul.f32 %v667_v50, %v667_v50  ;;  %v229_v59 = vmul.f32 %v672_v33, %v672_v33  ;;  %v691_v62 = vsub.f32 %v611_v58, %v207_v40  ;;  %v230_v52 = vmul.f32 %v679_v55, %v679_v55 }
  0xd6   :  { %v240_v44 = vsel %vm162_vm1, %v224_v47, 0.0  ;;  %v241_v51 = vsel %vm162_vm1, %v225_v49, 0.0  ;;  %v243_v56 = vsel %vm162_vm1, %v226_v35, 0.0  ;;  %v245_v60 = vsel %vm162_vm1, %v227_v36, 0.0 }
  0xd7   :  { %v242_v54 = vadd.f32 %v241_v51, %v240_v44  ;;  %v247_v0 = vsel %vm162_vm1, %v228_v43, 0.0  ;;  %v697_v4 = vsub.f32 %v617_v63, %v207_v40  ;;  %v231_v53 = vmul.f32 %v685_v48, %v685_v48 }
  0xd8   :  { %v249_v5 = vsel %vm162_vm1, %v229_v59, 0.0  ;;  %v703_v7 = vsub.f32 %v621_v2, %v207_v40  ;;  %v232_v58 = vmul.f32 %v691_v62, %v691_v62  ;;  %v251_v9 = vsel %vm162_vm1, %v230_v52, 0.0 }
  0xd9   :  { %v244_v57 = vadd.f32 %v243_v56, %v242_v54  ;;  %v709_v11 = vsub.f32 %v623_v3, %v207_v40  ;;  %v233_v63 = vmul.f32 %v697_v4, %v697_v4  ;;  %v253_v12 = vsel %vm162_vm1, %v231_v53, 0.0 }
  0xda   :  { %v715_v15 = vsub.f32 %v627_v8, %v207_v40  ;;  %v234_v2 = vmul.f32 %v703_v7, %v703_v7  ;;  %v255_v16 = vsel %vm162_vm1, %v232_v58, 0.0  ;;  %v221_v20 = vsub.f32 %v633_v13, %v207_v40 }
  0xdb   :  { %v246_v61 = vadd.f32 %v245_v60, %v244_v57  ;;  %v235_v3 = vmul.f32 %v709_v11, %v709_v11  ;;  %v257_v21 = vsel %vm162_vm1, %v233_v63, 0.0  ;;  %v222_v23 = vsub.f32 %v637_v17, %v207_v40 }
  0xdc   :  { %v236_v8 = vmul.f32 %v715_v15, %v715_v15  ;;  %v259_v24 = vsel %vm162_vm1, %v234_v2, 0.0  ;;  %v223_v26 = vsub.f32 %v639_v18, %v207_v40  ;;  %v237_v27 = vmul.f32 %v221_v20, %v221_v20 }
  0xdd   :  { %v248_v1 = vadd.f32 %v247_v0, %v246_v61  ;;  %v261_v28 = vsel %vm162_vm1, %v235_v3, 0.0  ;;  %v238_v29 = vmul.f32 %v222_v23, %v222_v23 }
  0xde   :  { %v263_v31 = vsel %vm162_vm1, %v236_v8, 0.0  ;;  %v239_v32 = vmul.f32 %v223_v26, %v223_v26  ;;  %v265_v34 = vsel %vm162_vm1, %v237_v27, 0.0 }
  0xdf   :  { %v250_v6 = vadd.f32 %v249_v5, %v248_v1  ;;  %v267_v37 = vsel %vm162_vm1, %v238_v29, 0.0 }
  0xe0   :  { %v269_v47 = vsel %vm162_vm1, %v239_v32, 0.0 }
  0xe1   :  { %v252_v10 = vadd.f32 %v251_v9, %v250_v6  ;;  %v455_v6 = vld [vmem:[%s844_s3] ss:$0 sm:$0xff] }
  0xe3   :  { %v254_v14 = vadd.f32 %v253_v12, %v252_v10 }
  0xe5   :  { %v256_v19 = vadd.f32 %v255_v16, %v254_v14 }
  0xe7   :  { %v258_v22 = vadd.f32 %v257_v21, %v256_v19 }
  0xe9   :  { %v260_v25 = vadd.f32 %v259_v24, %v258_v22 }
  0xeb   :  { %v262_v13 = vadd.f32 %v261_v28, %v260_v25 }
  0xed   :  { %v264_v30 = vadd.f32 %v263_v31, %v262_v13 }
  0xef   :  { %v266_v17 = vadd.f32 %v265_v34, %v264_v30 }
  0xf1   :  { %v268_v39 = vadd.f32 %v267_v37, %v266_v17 }
  0xf3   :  { %v270_v49 = vadd.f32 %v269_v47, %v268_v39 }
  0xf5   :  { %v271_v35 = vrot.slane %v270_v49, 4 }
  0xf7   :  { %v272_v18 = vadd.f32 %v271_v35, %v270_v49 }
  0xf9   :  { %v273_v40 = vrot.slane %v272_v18, 2 }
  0xfb   :  { %v274_v36 = vadd.f32 %v273_v40, %v272_v18 }
  0xfd   :  { %v275_v44 = vrot.slane %v274_v36, 1 }
  0xff   :  { %v276_v51 = vadd.f32 %v275_v44, %v274_v36 }
 0x101   :  { %v277_v54 = vmul.f32 %v276_v51, %v647_v38 }
 0x103   :  { %v278_v43 = vadd.f32 1e-05, %v277_v54 }
 0x105   :  { %459 = vrsqrt.f32 %v278_v43  ;;  %vm285_vm4 = vweird.f32 %v278_v43 }
 0x10b   :  { %v460_v56 = vpop.eup %459 }
 0x10c   :  { %v280_v57 = vmul.f32 %v460_v56, %v278_v43  ;;  %vm286_vm3 = vweird.f32 %v460_v56 }
 0x10d   :  { %vm287_vm5 = vmor %vm285_vm4, %vm286_vm3 }
 0x10e   :  { %v281_v59 = vmul.f32 %v460_v56, %v280_v57 }
 0x110   :  { %v282_v60 = vmul.f32 0.5, %v281_v59 }
 0x112   :  { %v283_v61 = vsub.f32 1.5, %v282_v60 }
 0x114   :  { %v284_v52 = vmul.f32 %v460_v56, %v283_v61 }
 0x116   :  { %v288_v0 = vsel %vm287_vm5, %v460_v56, %v284_v52 }
 0x117   :  { %v294_v1 = vmul.f32 %v288_v0, %v672_v33  ;;  %v295_v53 = vmul.f32 %v288_v0, %v679_v55  ;;  %v289_v5 = vmul.f32 %v288_v0, %v651_v41  ;;  %v290_v38 = vmul.f32 %v288_v0, %v654_v42  ;;  %v748_v33 = vld [vmem:[%s845_s4] ss:$0 sm:$0xff] }
 0x118   :  { %v291_v58 = vmul.f32 %v288_v0, %v657_v45  ;;  %v292_v9 = vmul.f32 %v288_v0, %v660_v46  ;;  %v293_v10 = vmul.f32 %v288_v0, %v667_v50  ;;  %v296_v41 = vmul.f32 %v288_v0, %v685_v48 }
 0x119   :  { %v309_v63 = vmul.f32 %v455_v6, %v289_v5  ;;  %v310_v12 = vmul.f32 %v455_v6, %v290_v38  ;;  %v297_v55 = vmul.f32 %v288_v0, %v691_v62  ;;  %v298_v14 = vmul.f32 %v288_v0, %v697_v4 }
 0x11a   :  { %v311_v42 = vmul.f32 %v455_v6, %v291_v58  ;;  %v299_v45 = vmul.f32 %v288_v0, %v703_v7  ;;  %v312_v2 = vmul.f32 %v455_v6, %v292_v9  ;;  %v300_v46 = vmul.f32 %v288_v0, %v709_v11 }
 0x11b   :  { %v301_v50 = vmul.f32 %v288_v0, %v715_v15  ;;  %v302_v16 = vmul.f32 %v288_v0, %v221_v20  ;;  %v313_v19 = vmul.f32 %v455_v6, %v293_v10  ;;  %v303_v3 = vmul.f32 %v288_v0, %v222_v23 }
 0x11c   :  { %v314_v21 = vmul.f32 %v455_v6, %v294_v1  ;;  %v329_v22 = vadd.f32 %v748_v33, %v309_v63  ;;  %v330_v48 = vadd.f32 %v748_v33, %v310_v12  ;;  %v304_v8 = vmul.f32 %v288_v0, %v223_v26 }
 0x11d   :  { %v315_v24 = vmul.f32 %v455_v6, %v295_v53  ;;  %v316_v62 = vmul.f32 %v455_v6, %v296_v41  ;;  %v331_v4 = vadd.f32 %v748_v33, %v311_v42  ;;  %v317_v25 = vmul.f32 %v455_v6, %v297_v55 }
 0x11e   :  { %v318_v7 = vmul.f32 %v455_v6, %v298_v14  ;;  %v319_v27 = vmul.f32 %v455_v6, %v299_v45  ;;  %v332_v11 = vadd.f32 %v748_v33, %v312_v2  ;;  %v320_v28 = vmul.f32 %v455_v6, %v300_v46 }
 0x11f   :  { %v321_v15 = vmul.f32 %v455_v6, %v301_v50  ;;  %v322_v20 = vmul.f32 %v455_v6, %v302_v16  ;;  %v333_v23 = vadd.f32 %v748_v33, %v313_v19  ;;  %v323_v13 = vmul.f32 %v455_v6, %v303_v3 }
 0x120   :  { %v334_v29 = vadd.f32 %v748_v33, %v314_v21  ;;  %vm345_vm6 = vcmp.gt.f32.partialorder %v329_v22, 0.0  ;;  %vm346_vm7 = vcmp.gt.f32.partialorder %v330_v48, 0.0  ;;  %v335_v26 = vadd.f32 %v748_v33, %v315_v24 }
 0x121   :  { %v361_v31 = vmul.f32 0.01, %v329_v22  ;;  %v362_v30 = vmul.f32 0.01, %v330_v48  ;;  %v363_v32 = vmul.f32 0.01, %v331_v4  ;;  %v324_v34 = vmul.f32 %v455_v6, %v304_v8 }
 0x122   :  { %v336_v17 = vadd.f32 %v748_v33, %v316_v62  ;;  %vm347_vm8 = vcmp.gt.f32.partialorder %v331_v4, 0.0  ;;  %v364_v37 = vmul.f32 0.01, %v332_v11  ;;  %v337_v39 = vadd.f32 %v748_v33, %v317_v25 }
 0x123   :  { %vm348_vm9 = vcmp.gt.f32.partialorder %v332_v11, 0.0  ;;  %v365_v47 = vmul.f32 0.01, %v333_v23  ;;  %v377_v49 = vsel %vm345_vm6, %v329_v22, %v361_v31  ;;  %v338_v35 = vadd.f32 %v748_v33, %v318_v7 }
 0x124   :  { %vm349_vm10 = vcmp.gt.f32.partialorder %v333_v23, 0.0  ;;  %v366_v18 = vmul.f32 0.01, %v334_v29  ;;  %v378_v40 = vsel %vm346_vm7, %v330_v48, %v362_v30  ;;  %v339_v36 = vadd.f32 %v748_v33, %v319_v27  ;;  %393 = vst.msk [vmem:[%s846_s5] sm:$0xff] %vm162_vm1, %v377_v49 }
 0x125   :  { %vm350_vm11 = vcmp.gt.f32.partialorder %v334_v29, 0.0  ;;  %v367_v44 = vmul.f32 0.01, %v335_v26  ;;  %v379_v51 = vsel %vm347_vm8, %v331_v4, %v363_v32  ;;  %v340_v54 = vadd.f32 %v748_v33, %v320_v28  ;;  %394 = vst.msk [vmem:[%s846_s5 + $0x8] sm:$0xff] %vm162_vm1, %v378_v40 }
 0x126   :  { %vm351_vm12 = vcmp.gt.f32.partialorder %v335_v26, 0.0  ;;  %v368_v43 = vmul.f32 0.01, %v336_v17  ;;  %v380_v56 = vsel %vm348_vm9, %v332_v11, %v364_v37  ;;  %v341_v57 = vadd.f32 %v748_v33, %v321_v15  ;;  %395 = vst.msk [vmem:[%s846_s5 + $0x10] sm:$0xff] %vm162_vm1, %v379_v51 }
 0x127   :  { %vm352_vm13 = vcmp.gt.f32.partialorder %v336_v17, 0.0  ;;  %v369_v59 = vmul.f32 0.01, %v337_v39  ;;  %v381_v60 = vsel %vm349_vm10, %v333_v23, %v365_v47  ;;  %v342_v61 = vadd.f32 %v748_v33, %v322_v20  ;;  %396 = vst.msk [vmem:[%s846_s5 + $0x18] sm:$0xff] %vm162_vm1, %v380_v56 }
 0x128   :  { %vm353_vm14 = vcmp.gt.f32.partialorder %v337_v39, 0.0  ;;  %v370_v52 = vmul.f32 0.01, %v338_v35  ;;  %v382_v0 = vsel %vm350_vm11, %v334_v29, %v366_v18  ;;  %v343_v1 = vadd.f32 %v748_v33, %v323_v13  ;;  %397 = vst.msk [vmem:[%s846_s5 + $0x20] sm:$0xff] %vm162_vm1, %v381_v60 }
 0x129   :  { %vm354_vm15 = vcmp.gt.f32.partialorder %v338_v35, 0.0  ;;  %v371_v53 = vmul.f32 0.01, %v339_v36  ;;  %v383_v5 = vsel %vm351_vm12, %v335_v26, %v367_v44  ;;  %v344_v38 = vadd.f32 %v748_v33, %v324_v34  ;;  %398 = vst.msk [vmem:[%s846_s5 + $0x28] sm:$0xff] %vm162_vm1, %v382_v0 }
 0x12a   :  { %vm355_vm0 = vcmp.gt.f32.partialorder %v339_v36, 0.0  ;;  %v372_v6 = vmul.f32 0.01, %v340_v54  ;;  %v384_v58 = vsel %vm352_vm13, %v336_v17, %v368_v43  ;;  %vm356_vm2 = vcmp.gt.f32.partialorder %v340_v54, 0.0  ;;  %399 = vst.msk [vmem:[%s846_s5 + $0x30] sm:$0xff] %vm162_vm1, %v383_v5 }
 0x12b   :  { %v373_v9 = vmul.f32 0.01, %v341_v57  ;;  %v385_v10 = vsel %vm353_vm14, %v337_v39, %v369_v59  ;;  %vm357_vm3 = vcmp.gt.f32.partialorder %v341_v57, 0.0  ;;  %v374_v63 = vmul.f32 0.01, %v342_v61  ;;  %400 = vst.msk [vmem:[%s846_s5 + $0x38] sm:$0xff] %vm162_vm1, %v384_v58 }
 0x12c   :  { %v386_v12 = vsel %vm354_vm15, %v338_v35, %v370_v52  ;;  %vm358_vm4 = vcmp.gt.f32.partialorder %v342_v61, 0.0  ;;  %v375_v33 = vmul.f32 0.01, %v343_v1  ;;  %v387_v41 = vsel %vm355_vm0, %v339_v36, %v371_v53  ;;  %401 = vst.msk [vmem:[%s846_s5 + $0x40] sm:$0xff] %vm162_vm1, %v385_v10 }
 0x12d   :  { %vm359_vm5 = vcmp.gt.f32.partialorder %v343_v1, 0.0  ;;  %v376_v42 = vmul.f32 0.01, %v344_v38  ;;  %v388_v55 = vsel %vm356_vm2, %v340_v54, %v372_v6  ;;  %vm360_vm6 = vcmp.gt.f32.partialorder %v344_v38, 0.0  ;;  %402 = vst.msk [vmem:[%s846_s5 + $0x48] sm:$0xff] %vm162_vm1, %v386_v12 }
 0x12e   :  { %v389_v14 = vsel %vm357_vm3, %v341_v57, %v373_v9  ;;  %v390_v45 = vsel %vm358_vm4, %v342_v61, %v374_v63  ;;  %403 = vst.msk [vmem:[%s846_s5 + $0x50] sm:$0xff] %vm162_vm1, %v387_v41  ;;  %v391_v2 = vsel %vm359_vm5, %v343_v1, %v375_v33 }
 0x12f   :  { %404 = vst.msk [vmem:[%s846_s5 + $0x58] sm:$0xff] %vm162_vm1, %v388_v55  ;;  %v392_v46 = vsel %vm360_vm6, %v344_v38, %v376_v42 }
 0x130   :  { %405 = vst.msk [vmem:[%s846_s5 + $0x60] sm:$0xff] %vm162_vm1, %v389_v14 }
 0x131   :  { %406 = vst.msk [vmem:[%s846_s5 + $0x68] sm:$0xff] %vm162_vm1, %v390_v45 }
 0x132   :  { %407 = vst.msk [vmem:[%s846_s5 + $0x70] sm:$0xff] %vm162_vm1, %v391_v2 }
 0x133   :  { %408 = vst.msk [vmem:[%s846_s5 + $0x78] sm:$0xff] %vm162_vm1, %v392_v46 }

// kernel: _forward.5
= control target key start
LH: loop header
LB: loop body
LE: loop exit
PB: predicated region body
PF: predicated region fallthrough
CT: control target
= control target key end

     0   :  { %vm103_vm0 = vcmask 261120   ;;  %s871_s0 = inlined_call_operand.vmem [shape: f32[128,288], index: 0, kind: input, shape index: {}]   ;;  %s872_s1 = inlined_call_operand.vmem [shape: f32[288,32], index: 1, kind: input, shape index: {}]   ;;  %s873_s2 = inlined_call_operand.vmem [shape: f32[1,32], index: 2, kind: input, shape index: {}]   ;;  %s874_s3 = inlined_call_operand.hbm [shape: f32[128,32], index: 3, kind: output, shape index: {}]  }
   0x1   :  { %v78_v0 = vld [vmem:[%s872_s1 + $0x78] sm:$0xff]  ;;  %v77_v2 = vld [vmem:[%s872_s1 + $0x70] sm:$0xff]  ;;  %v76_v5 = vld [vmem:[%s872_s1 + $0x68] sm:$0xff] }
   0x2   :  { %v492_v1 = vld [vmem:[%s872_s1 + $0x118] sm:$0xff]  ;;  %152 = vmatpush.msra.mxu0 %v78_v0  ;;  %397 = vmatpush.msra.mxu3 %v78_v0  ;;  %v505_v4 = vld [vmem:[%s872_s1 + $0x110] sm:$0xff]  ;;  %v520_v7 = vld [vmem:[%s872_s1 + $0x108] sm:$0xff] }
   0x3   :  { %v500_v3 = vld [vmem:[%s872_s1 + $0xf8] sm:$0xff]  ;;  %294 = vmatpush.msra.mxu2 %v492_v1  ;;  %v515_v6 = vld [vmem:[%s872_s1 + $0xf0] sm:$0xff]  ;;  %v525_v8 = vld [vmem:[%s872_s1 + $0xe8] sm:$0xff] }
   0x4   :  { %217 = vmatpush.msra.mxu1 %v500_v3  ;;  %153 = vmatpush.msra.mxu0 %v77_v2  ;;  %v75_v9 = vld [vmem:[%s872_s1 + $0x60] sm:$0xff]  ;;  %v17_v12 = vld [vmem:[%s871_s0 + $0x10] sm:$0xff]  ;;  %v74_v13 = vld [vmem:[%s872_s1 + $0x58] sm:$0xff] }
   0x5   :  { %398 = vmatpush.msra.mxu3 %v77_v2  ;;  %295 = vmatpush.msra.mxu2 %v505_v4  ;;  %v535_v10 = vld [vmem:[%s872_s1 + $0x100] sm:$0xff]  ;;  %v553_v14 = vld [vmem:[%s872_s1 + $0xd8] sm:$0xff]  ;;  %v73_v15 = vld [vmem:[%s872_s1 + $0x50] sm:$0xff] }
   0x6   :  { %218 = vmatpush.msra.mxu1 %v515_v6  ;;  %154 = vmatpush.msra.mxu0 %v76_v5  ;;  %v540_v11 = vld [vmem:[%s872_s1 + $0xe0] sm:$0xff]  ;;  %v564_v16 = vld [vmem:[%s872_s1 + $0xd0] sm:$0xff]  ;;  %v72_v17 = vld [vmem:[%s872_s1 + $0x48] sm:$0xff] }
   0x7   :  { %399 = vmatpush.msra.mxu3 %v76_v5  ;;  %296 = vmatpush.msra.mxu2 %v520_v7  ;;  %v573_v18 = vld [vmem:[%s872_s1 + $0xc8] sm:$0xff]  ;;  %v71_v19 = vld [vmem:[%s872_s1 + $0x40] sm:$0xff]  ;;  %v70_v22 = vld [vmem:[%s872_s1 + $0x38] sm:$0xff] }
   0x8   :  { %219 = vmatpush.msra.mxu1 %v525_v8  ;;  %155 = vmatpush.msra.mxu0 %v75_v9  ;;  %v582_v20 = vld [vmem:[%s872_s1 + $0xc0] sm:$0xff]  ;;  %v20_v21 = vld [vmem:[%s871_s0 + $0x28] sm:$0xff]  ;;  %v594_v23 = vld [vmem:[%s872_s1 + $0xb8] sm:$0xff] }
   0x9   :  { %400 = vmatpush.msra.mxu3 %v75_v9  ;;  %297 = vmatpush.msra.mxu2 %v535_v10  ;;  %v69_v24 = vld [vmem:[%s872_s1 + $0x30] sm:$0xff] }
   0xa   :  { %220 = vmatpush.msra.mxu1 %v540_v11  ;;  %381 = vmatmul.msk.f32.vlgmr.msra.gmra.mxu2 %vm103_vm0, %v17_v12  ;;  %v604_v25 = vld [vmem:[%s872_s1 + $0xb0] sm:$0xff] }
   0xb   :  { %156 = vmatpush.msra.mxu0 %v74_v13  ;;  %401 = vmatpush.msra.mxu3 %v74_v13 }
   0xc   :  { %221 = vmatpush.msra.mxu1 %v553_v14 }
   0xd   :  { %157 = vmatpush.msra.mxu0 %v73_v15  ;;  %402 = vmatpush.msra.mxu3 %v73_v15 }
   0xe   :  { %222 = vmatpush.msra.mxu1 %v564_v16 }
   0xf   :  { %158 = vmatpush.msra.mxu0 %v72_v17  ;;  %403 = vmatpush.msra.mxu3 %v72_v17 }
  0x10   :  { %223 = vmatpush.msra.mxu1 %v573_v18 }
  0x11   :  { %159 = vmatpush.msra.mxu0 %v71_v19  ;;  %404 = vmatpush.msra.mxu3 %v71_v19 }
  0x12   :  { %224 = vmatpush.msra.mxu1 %v582_v20  ;;  %382 = vmatmul.msk.f32.gmra.mxu2 %vm103_vm0, %v20_v21 }
  0x13   :  { %160 = vmatpush.msra.mxu0 %v70_v22 }
  0x14   :  { %8 = vsyncpa [#allocation3], 0  ;;  %405 = vmatpush.msra.mxu3 %v70_v22  ;;  %225 = vmatpush.msra.mxu1 %v594_v23  ;;  %v68_v26 = vld [vmem:[%s872_s1 + $0x28] sm:$0xff]  ;;  %v67_v28 = vld [vmem:[%s872_s1 + $0x20] sm:$0xff]  ;;  %s464_s19 = smov 128   ;;  %s465_s20 = smov 8  }
  0x15   :  { %161 = vmatpush.msra.mxu0 %v69_v24  ;;  %v613_v27 = vld [vmem:[%s872_s1 + $0xa8] sm:$0xff]  ;;  %v622_v29 = vld [vmem:[%s872_s1 + $0xa0] sm:$0xff]  ;;  %v66_v31 = vld [vmem:[%s872_s1 + $0x18] sm:$0xff] }
  0x16   :  { %406 = vmatpush.msra.mxu3 %v69_v24  ;;  %226 = vmatpush.msra.mxu1 %v604_v25  ;;  %v23_v30 = vld [vmem:[%s871_s0 + $0x40] sm:$0xff]  ;;  %v634_v32 = vld [vmem:[%s872_s1 + $0x98] sm:$0xff]  ;;  %v65_v33 = vld [vmem:[%s872_s1 + $0x10] sm:$0xff] }
  0x17   :  { %162 = vmatpush.msra.mxu0 %v68_v26  ;;  %v81_v34 = vld [vmem:[%s872_s1 + $0x90] sm:$0xff]  ;;  %v64_v35 = vld [vmem:[%s872_s1 + $0x8] sm:$0xff]  ;;  %v63_v37 = vld [vmem:[%s872_s1] sm:$0xff] }
  0x18   :  { %407 = vmatpush.msra.mxu3 %v68_v26  ;;  %227 = vmatpush.msra.mxu1 %v613_v27  ;;  %v80_v36 = vld [vmem:[%s872_s1 + $0x88] sm:$0xff]  ;;  %v15_v38 = vld [vmem:[%s871_s0] sm:$0xff]  ;;  %v26_v40 = vld [vmem:[%s871_s0 + $0x58] sm:$0xff] }
  0x19   :  { %163 = vmatpush.msra.mxu0 %v67_v28  ;;  %v51_v39 = vld [vmem:[%s871_s0 + $0x120] sm:$0xff]  ;;  %v16_v42 = vld [vmem:[%s871_s0 + $0x8] sm:$0xff]  ;;  %v18_v43 = vld [vmem:[%s871_s0 + $0x18] sm:$0xff] }
  0x1a   :  { %408 = vmatpush.msra.mxu3 %v67_v28  ;;  %228 = vmatpush.msra.mxu1 %v622_v29  ;;  %v79_v41 = vld [vmem:[%s872_s1 + $0x80] sm:$0xff]  ;;  %v54_v44 = vld [vmem:[%s871_s0 + $0x138] sm:$0xff]  ;;  %v29_v45 = vld [vmem:[%s871_s0 + $0x70] sm:$0xff]  ;;  %s369_s1 = sshll.u32 %s874_s3, 4  ;;  %s370_s1 = int_to_ptr.hbm [resolvable:$true] %s369_s1 }
  0x1b   :  { %383 = vmatmul.msk.f32.gmra.mxu2 %vm103_vm0, %v23_v30  ;;  %164 = vmatpush.msra.mxu0 %v66_v31  ;;  %v19_v46 = vld [vmem:[%s871_s0 + $0x20] sm:$0xff]  ;;  %v21_v47 = vld [vmem:[%s871_s0 + $0x30] sm:$0xff]  ;;  %v32_v49 = vld [vmem:[%s871_s0 + $0x88] sm:$0xff] }
  0x1c   :  { %409 = vmatpush.msra.mxu3 %v66_v31  ;;  %229 = vmatpush.msra.mxu1 %v634_v32  ;;  %v57_v48 = vld [vmem:[%s871_s0 + $0x150] sm:$0xff]  ;;  %v22_v50 = vld [vmem:[%s871_s0 + $0x38] sm:$0xff]  ;;  %v24_v51 = vld [vmem:[%s871_s0 + $0x48] sm:$0xff] }
  0x1d   :  { %165 = vmatpush.msra.mxu0 %v65_v33  ;;  %v60_v52 = vld [vmem:[%s871_s0 + $0x168] sm:$0xff]  ;;  %v35_v53 = vld [vmem:[%s871_s0 + $0xa0] sm:$0xff]  ;;  %v25_v54 = vld [vmem:[%s871_s0 + $0x50] sm:$0xff] }
  0x1e   :  { %410 = vmatpush.msra.mxu3 %v65_v33  ;;  %230 = vmatpush.msra.mxu1 %v81_v34  ;;  %v27_v55 = vld [vmem:[%s871_s0 + $0x60] sm:$0xff]  ;;  %v52_v56 = vld [vmem:[%s871_s0 + $0x128] sm:$0xff]  ;;  %v38_v57 = vld [vmem:[%s871_s0 + $0xb8] sm:$0xff] }
  0x1f   :  { %166 = vmatpush.msra.mxu0 %v64_v35  ;;  %v28_v58 = vld [vmem:[%s871_s0 + $0x68] sm:$0xff]  ;;  %v30_v59 = vld [vmem:[%s871_s0 + $0x78] sm:$0xff]  ;;  %v55_v60 = vld [vmem:[%s871_s0 + $0x140] sm:$0xff] }
  0x20   :  { %411 = vmatpush.msra.mxu3 %v64_v35  ;;  %231 = vmatpush.msra.mxu1 %v80_v36  ;;  %v41_v61 = vld [vmem:[%s871_s0 + $0xd0] sm:$0xff]  ;;  %v31_v62 = vld [vmem:[%s871_s0 + $0x80] sm:$0xff]  ;;  %v58_v0 = vld [vmem:[%s871_s0 + $0x158] sm:$0xff] }
  0x21   :  { %167 = vmatpush.msra.mxu0 %v63_v37  ;;  %v33_v63 = vld [vmem:[%s871_s0 + $0x90] sm:$0xff]  ;;  %v34_v2 = vld [vmem:[%s871_s0 + $0x98] sm:$0xff]  ;;  %v47_v5 = vld [vmem:[%s871_s0 + $0x100] sm:$0xff] }
  0x22   :  { %412 = vmatpush.msra.mxu3 %v63_v37  ;;  %168 = vmatmul.f32.vlgmr.msra.gmra.mxu0 %v15_v38  ;;  %v62_v9 = vld [vmem:[%s871_s0 + $0x178] sm:$0xff]  ;;  %v53_v12 = vld [vmem:[%s871_s0 + $0x130] sm:$0xff]  ;;  %v43_v13 = vld [vmem:[%s871_s0 + $0xe0] sm:$0xff] }
  0x23   :  { %204 = vmatmul.f32.vlgmr.msra.gmra.mxu3 %v51_v39  ;;  %384 = vmatmul.msk.f32.gmra.mxu2 %vm103_vm0, %v26_v40  ;;  %v56_v15 = vld [vmem:[%s871_s0 + $0x148] sm:$0xff]  ;;  %v49_v19 = vld [vmem:[%s871_s0 + $0x110] sm:$0xff]  ;;  %v825_v22 = vld [vmem:[%s873_s2] ss:$0 sm:$0xff] }
  0x24   :  { %413 = vmatpush.msrb.mxu3 %v500_v3  ;;  %232 = vmatpush.msra.mxu1 %v79_v41  ;;  %v36_v3 = vld [vmem:[%s871_s0 + $0xa8] sm:$0xff] }
  0x25   :  { %233 = vmatmul.f32.vlgmr.msra.gmra.mxu1 %v16_v42  ;;  %v48_v17 = vld [vmem:[%s871_s0 + $0x108] sm:$0xff] }
  0x26   :  { %414 = vmatpush.msrb.mxu3 %v515_v6  ;;  %v37_v6 = vld [vmem:[%s871_s0 + $0xb0] sm:$0xff] }
  0x28   :  { %415 = vmatpush.msrb.mxu3 %v525_v8  ;;  %v50_v8 = vld [vmem:[%s871_s0 + $0x118] sm:$0xff] }
  0x2a   :  { %416 = vmatpush.msrb.mxu3 %v540_v11  ;;  %171 = vmatmul.f32.gmra.mxu0 %v18_v43  ;;  %v42_v11 = vld [vmem:[%s871_s0 + $0xd8] sm:$0xff] }
  0x2b   :  { %207 = vmatmul.f32.gmra.mxu3 %v54_v44  ;;  %385 = vmatmul.msk.f32.gmra.mxu2 %vm103_vm0, %v29_v45 }
  0x2c   :  { %417 = vmatpush.msrb.mxu3 %v553_v14  ;;  %v45_v14 = vld [vmem:[%s871_s0 + $0xf0] sm:$0xff] }
  0x2d   :  { %236 = vmatmul.f32.gmra.mxu1 %v19_v46 }
  0x2e   :  { %418 = vmatpush.msrb.mxu3 %v564_v16  ;;  %v46_v16 = vld [vmem:[%s871_s0 + $0xf8] sm:$0xff] }
  0x30   :  { %419 = vmatpush.msrb.mxu3 %v573_v18  ;;  %v59_v18 = vld [vmem:[%s871_s0 + $0x160] sm:$0xff] }
  0x32   :  { %420 = vmatpush.msrb.mxu3 %v582_v20  ;;  %174 = vmatmul.f32.gmra.mxu0 %v21_v47 }
  0x33   :  { %210 = vmatmul.f32.gmra.mxu3 %v57_v48  ;;  %386 = vmatmul.msk.f32.gmra.mxu2 %vm103_vm0, %v32_v49 }
  0x34   :  { %421 = vmatpush.msrb.mxu3 %v594_v23 }
  0x35   :  { %239 = vmatmul.f32.gmra.mxu1 %v22_v50 }
  0x36   :  { %422 = vmatpush.msrb.mxu3 %v604_v25 }
  0x38   :  { %423 = vmatpush.msrb.mxu3 %v613_v27 }
  0x3a   :  { %424 = vmatpush.msrb.mxu3 %v622_v29  ;;  %177 = vmatmul.f32.gmra.mxu0 %v24_v51 }
  0x3b   :  { %213 = vmatmul.f32.gmra.mxu3 %v60_v52  ;;  %387 = vmatmul.msk.f32.gmra.mxu2 %vm103_vm0, %v35_v53 }
  0x3c   :  { %425 = vmatpush.msrb.mxu3 %v634_v32 }
  0x3d   :  { %242 = vmatmul.f32.gmra.mxu1 %v25_v54 }
  0x3e   :  { %426 = vmatpush.msrb.mxu3 %v81_v34 }
  0x40   :  { %427 = vmatpush.msrb.mxu3 %v80_v36 }
  0x42   :  { %428 = vmatpush.msrb.mxu3 %v79_v41  ;;  %180 = vmatmul.f32.gmra.mxu0 %v27_v55 }
  0x43   :  { %269 = vmatmul.f32.vlgmr.msrb.gmra.mxu3 %v52_v56  ;;  %388 = vmatmul.msk.f32.gmra.mxu2 %vm103_vm0, %v38_v57 }
  0x44   :  { %429 = vmatpush.msra.mxu3 %v492_v1  ;;  %v44_v1 = vld [vmem:[%s871_s0 + $0xe8] sm:$0xff] }
  0x45   :  { %245 = vmatmul.f32.gmra.mxu1 %v28_v58 }
  0x46   :  { %430 = vmatpush.msra.mxu3 %v505_v4  ;;  %v61_v4 = vld [vmem:[%s871_s0 + $0x170] sm:$0xff] }
  0x48   :  { %431 = vmatpush.msra.mxu3 %v520_v7  ;;  %v39_v7 = vld [vmem:[%s871_s0 + $0xc0] sm:$0xff] }
  0x4a   :  { %183 = vmatmul.f32.gmra.mxu0 %v30_v59  ;;  %432 = vmatpush.msra.mxu3 %v535_v10  ;;  %v40_v10 = vld [vmem:[%s871_s0 + $0xc8] sm:$0xff]  ;;  %s463_s0 = smov [#allocation2]  }
  0x4b   :  { %272 = vmatmul.f32.gmra.mxu3 %v55_v60  ;;  %389 = vmatmul.msk.f32.gmra.mxu2 %vm103_vm0, %v41_v61  ;;  %s367_s2 = sshll.u32 %s463_s0, 4  ;;  %s368_s2 = int_to_ptr.vmem [resolvable:$true] %s367_s2 }
  0x4d   :  { %248 = vmatmul.f32.gmra.mxu1 %v31_v62 }
  0x52   :  { %186 = vmatmul.f32.gmra.mxu0 %v33_v63 }
  0x53   :  { %275 = vmatmul.f32.gmra.mxu3 %v58_v0  ;;  %390 = vmatmul.msk.f32.gmra.mxu2 %vm103_vm0, %v44_v1 }
  0x55   :  { %251 = vmatmul.f32.gmra.mxu1 %v34_v2 }
  0x5a   :  { %189 = vmatmul.f32.gmra.mxu0 %v36_v3 }
  0x5b   :  { %278 = vmatmul.f32.gmra.mxu3 %v61_v4  ;;  %391 = vmatmul.msk.f32.gmra.mxu2 %vm103_vm0, %v47_v5 }
  0x5d   :  { %254 = vmatmul.f32.gmra.mxu1 %v37_v6 }
  0x62   :  { %192 = vmatmul.f32.gmra.mxu0 %v39_v7 }
  0x63   :  { %392 = vmatmul.msk.f32.gmra.mxu2 %vm103_vm0, %v50_v8  ;;  %396 = vmatmul.msk.f32.vlgmr.msra.gmra.mxu3 %vm103_vm0, %v62_v9 }
  0x65   :  { %257 = vmatmul.f32.gmra.mxu1 %v40_v10 }
  0x6a   :  { %195 = vmatmul.f32.gmra.mxu0 %v42_v11 }
  0x6b   :  { %393 = vmatmul.msk.f32.gmra.mxu2 %vm103_vm0, %v53_v12 }
  0x6d   :  { %260 = vmatmul.f32.gmra.mxu1 %v43_v13 }
  0x72   :  { %198 = vmatmul.f32.gmra.mxu0 %v45_v14 }
  0x73   :  { %394 = vmatmul.msk.f32.gmra.mxu2 %vm103_vm0, %v56_v15 }
  0x75   :  { %263 = vmatmul.f32.gmra.mxu1 %v46_v16 }
  0x7a   :  { %201 = vmatmul.f32.gmra.mxu0 %v48_v17 }
  0x7b   :  { %395 = vmatmul.msk.f32.gmra.mxu2 %vm103_vm0, %v59_v18 }
  0x7d   :  { %266 = vmatmul.f32.gmra.mxu1 %v49_v19 }
  0x8d   :  { %v299_v20 = vpop.f32.mrf.mxu2 }
  0x95   :  { %v302_v21 = vpop.f32.mrf.mxu2 }
  0x9e   :  { %v305_v23 = vpop.f32.mrf.mxu2 }
  0x9f   :  { %v169_v24 = vpop.f32.mrf.mxu0 }
  0xa0   :  { %v170_v25 = vadd.f32 %v825_v22, %v169_v24 }
  0xa2   :  { %v234_v26 = vpop.f32.mrf.mxu1 }
  0xa3   :  { %v235_v27 = vadd.f32 %v234_v26, %v170_v25 }
  0xa5   :  { %v300_v28 = vadd.f32 %v299_v20, %v235_v27 }
  0xa6   :  { %v828_v29 = vpop.f32.mrf.mxu3  ;;  %v308_v30 = vpop.f32.mrf.mxu2 }
  0xa7   :  { %347 = vst.msk [vmem:[#allocation2] sm:$0xff] %vm103_vm0, %v300_v28  ;;  %v172_v31 = vpop.f32.mrf.mxu0 }
  0xa8   :  { %v173_v32 = vadd.f32 %v825_v22, %v172_v31  ;;  %v206_v31 = vadd.f32 %v825_v22, %v828_v29 }
  0xaa   :  { %v237_v33 = vpop.f32.mrf.mxu1 }
  0xab   :  { %v238_v34 = vadd.f32 %v237_v33, %v173_v32 }
  0xad   :  { %v303_v35 = vadd.f32 %v302_v21, %v238_v34 }
  0xae   :  { %v832_v36 = vpop.f32.mrf.mxu3  ;;  %v311_v37 = vpop.f32.mrf.mxu2 }
  0xaf   :  { %348 = vst.msk [vmem:[#allocation2 + $0x8] sm:$0xff] %vm103_vm0, %v303_v35  ;;  %v175_v38 = vpop.f32.mrf.mxu0 }
  0xb0   :  { %v176_v39 = vadd.f32 %v825_v22, %v175_v38 }
  0xb2   :  { %v240_v40 = vpop.f32.mrf.mxu1 }
  0xb3   :  { %v241_v41 = vadd.f32 %v240_v40, %v176_v39 }
  0xb5   :  { %v306_v42 = vadd.f32 %v305_v23, %v241_v41  ;;  %v209_v41 = vadd.f32 %v825_v22, %v832_v36 }
  0xb6   :  { %v836_v43 = vpop.f32.mrf.mxu3  ;;  %v314_v44 = vpop.f32.mrf.mxu2 }
  0xb7   :  { %349 = vst.msk [vmem:[#allocation2 + $0x10] sm:$0xff] %vm103_vm0, %v306_v42  ;;  %v178_v45 = vpop.f32.mrf.mxu0 }
  0xb8   :  { %v179_v46 = vadd.f32 %v825_v22, %v178_v45 }
  0xba   :  { %v243_v47 = vpop.f32.mrf.mxu1 }
  0xbb   :  { %v244_v48 = vadd.f32 %v243_v47, %v179_v46 }
  0xbd   :  { %v309_v49 = vadd.f32 %v308_v30, %v244_v48 }
  0xbe   :  { %v214_v50 = vpop.f32.mrf.mxu3  ;;  %v317_v51 = vpop.f32.mrf.mxu2 }
  0xbf   :  { %350 = vst.msk [vmem:[#allocation2 + $0x18] sm:$0xff] %vm103_vm0, %v309_v49  ;;  %v181_v52 = vpop.f32.mrf.mxu0  ;;  %v215_v19 = vadd.f32 %v825_v22, %v214_v50  ;;  %v212_v50 = vadd.f32 %v825_v22, %v836_v43 }
  0xc0   :  { %v182_v53 = vadd.f32 %v825_v22, %v181_v52 }
  0xc2   :  { %v246_v54 = vpop.f32.mrf.mxu1 }
  0xc3   :  { %v247_v55 = vadd.f32 %v246_v54, %v182_v53 }
  0xc5   :  { %v312_v56 = vadd.f32 %v311_v37, %v247_v55 }
  0xc6   :  { %v270_v57 = vpop.f32.mrf.mxu3  ;;  %v320_v58 = vpop.f32.mrf.mxu2 }
  0xc7   :  { %351 = vst.msk [vmem:[#allocation2 + $0x20] sm:$0xff] %vm103_vm0, %v312_v56  ;;  %v184_v59 = vpop.f32.mrf.mxu0  ;;  %v271_v33 = vadd.f32 %v270_v57, %v206_v31 }
  0xc8   :  { %v185_v60 = vadd.f32 %v825_v22, %v184_v59 }
  0xca   :  { %v249_v61 = vpop.f32.mrf.mxu1 }
  0xcb   :  { %v250_v62 = vadd.f32 %v249_v61, %v185_v60 }
  0xcd   :  { %v315_v63 = vadd.f32 %v314_v44, %v250_v62 }
  0xce   :  { %v273_v0 = vpop.f32.mrf.mxu3  ;;  %v323_v1 = vpop.f32.mrf.mxu2 }
  0xcf   :  { %352 = vst.msk [vmem:[#allocation2 + $0x28] sm:$0xff] %vm103_vm0, %v315_v63  ;;  %v187_v2 = vpop.f32.mrf.mxu0  ;;  %v274_v44 = vadd.f32 %v273_v0, %v209_v41 }
  0xd0   :  { %v188_v3 = vadd.f32 %v825_v22, %v187_v2 }
  0xd2   :  { %v252_v4 = vpop.f32.mrf.mxu1 }
  0xd3   :  { %v253_v5 = vadd.f32 %v252_v4, %v188_v3 }
  0xd5   :  { %v318_v6 = vadd.f32 %v317_v51, %v253_v5 }
  0xd6   :  { %v276_v7 = vpop.f32.mrf.mxu3  ;;  %v326_v8 = vpop.f32.mrf.mxu2 }
  0xd7   :  { %353 = vst.msk [vmem:[#allocation2 + $0x30] sm:$0xff] %vm103_vm0, %v318_v6  ;;  %v190_v9 = vpop.f32.mrf.mxu0  ;;  %v277_v36 = vadd.f32 %v276_v7, %v212_v50 }
  0xd8   :  { %v191_v10 = vadd.f32 %v825_v22, %v190_v9 }
  0xda   :  { %v255_v11 = vpop.f32.mrf.mxu1 }
  0xdb   :  { %v256_v12 = vadd.f32 %v255_v11, %v191_v10 }
  0xdd   :  { %v321_v13 = vadd.f32 %v320_v58, %v256_v12 }
  0xde   :  { %v279_v14 = vpop.f32.mrf.mxu3  ;;  %v329_v15 = vpop.f32.mrf.mxu2 }
  0xdf   :  { %354 = vst.msk [vmem:[#allocation2 + $0x38] sm:$0xff] %vm103_vm0, %v321_v13  ;;  %v193_v16 = vpop.f32.mrf.mxu0  ;;  %v280_v21 = vadd.f32 %v279_v14, %v215_v19 }
  0xe0   :  { %v194_v17 = vadd.f32 %v825_v22, %v193_v16 }
  0xe2   :  { %v258_v18 = vpop.f32.mrf.mxu1 }
  0xe3   :  { %v259_v20 = vadd.f32 %v258_v18, %v194_v17 }
  0xe5   :  { %v324_v23 = vadd.f32 %v323_v1, %v259_v20 }
  0xe6   :  { %v332_v24 = vpop.f32.mrf.mxu2  ;;  %v344_v25 = vpop.f32.mrf.mxu3 }
  0xe7   :  { %355 = vst.msk [vmem:[#allocation2 + $0x40] sm:$0xff] %vm103_vm0, %v324_v23  ;;  %v345_v26 = vadd.f32 %v344_v25, %v280_v21  ;;  %v196_v27 = vpop.f32.mrf.mxu0 }
  0xe8   :  { %v197_v28 = vadd.f32 %v825_v22, %v196_v27 }
  0xe9   :  { %362 = vst.msk [vmem:[#allocation2 + $0x78] sm:$0xff] %vm103_vm0, %v345_v26 }
  0xea   :  { %v261_v30 = vpop.f32.mrf.mxu1 }
  0xeb   :  { %v262_v32 = vadd.f32 %v261_v30, %v197_v28 }
  0xed   :  { %v327_v34 = vadd.f32 %v326_v8, %v262_v32 }
  0xee   :  { %v335_v35 = vpop.f32.mrf.mxu2 }
  0xef   :  { %356 = vst.msk [vmem:[#allocation2 + $0x48] sm:$0xff] %vm103_vm0, %v327_v34  ;;  %v336_v37 = vadd.f32 %v335_v35, %v271_v33  ;;  %v199_v38 = vpop.f32.mrf.mxu0 }
  0xf0   :  { %v200_v39 = vadd.f32 %v825_v22, %v199_v38 }
  0xf1   :  { %359 = vst.msk [vmem:[#allocation2 + $0x60] sm:$0xff] %vm103_vm0, %v336_v37 }
  0xf2   :  { %v264_v40 = vpop.f32.mrf.mxu1 }
  0xf3   :  { %v265_v42 = vadd.f32 %v264_v40, %v200_v39 }
  0xf5   :  { %v330_v45 = vadd.f32 %v329_v15, %v265_v42 }
  0xf6   :  { %v338_v29 = vpop.f32.mrf.mxu2 }
  0xf7   :  { %357 = vst.msk [vmem:[#allocation2 + $0x50] sm:$0xff] %vm103_vm0, %v330_v45  ;;  %v339_v46 = vadd.f32 %v338_v29, %v274_v44  ;;  %v202_v47 = vpop.f32.mrf.mxu0 }
  0xf8   :  { %v203_v48 = vadd.f32 %v825_v22, %v202_v47 }
  0xf9   :  { %360 = vst.msk [vmem:[#allocation2 + $0x68] sm:$0xff] %vm103_vm0, %v339_v46 }
  0xfa   :  { %v267_v49 = vpop.f32.mrf.mxu1 }
  0xfb   :  { %v268_v51 = vadd.f32 %v267_v49, %v203_v48 }
  0xfd   :  { %v333_v52 = vadd.f32 %v332_v24, %v268_v51 }
  0xfe   :  { %v341_v53 = vpop.f32.mrf.mxu2 }
  0xff   :  { %358 = vst.msk [vmem:[#allocation2 + $0x58] sm:$0xff] %vm103_vm0, %v333_v52  ;;  %v342_v54 = vadd.f32 %v341_v53, %v277_v36 }
 0x101   :  { %361 = vst.msk [vmem:[#allocation2 + $0x70] sm:$0xff] %vm103_vm0, %v342_v54 }
 0x102   :  { %375 = dma.vmem_to_hbm [thread:$0]  %s368_s2, 2048, %s370_s1, [#allocation3], %s464_s19, %s464_s19, %s465_s20  }
 0x103   :  { %461 = dma.done.wait [#allocation3], 2048  }
 0x104   :  { %462 = vsyncadd [#allocation3], 4294965248 }
 0x105   :  { %380 = vsyncpa [#allocation3], 1 }

</bundles_post_ra>
